<compile_context>
chip_gen: v7x
topology: tpu7x:2x2x1
jax: 0.10.0
libtpu: 0.0.40
codegen_flags: <defaults>
</compile_context>

<pallas_src>
import jax
import jax.numpy as jnp
from jax.experimental import pallas as pl
from jax.experimental.pallas import tpu as pltpu


def logreg_embeddings_kernel(alpha_ref, seq_ref, fcw_ref, fcb_ref, out_ref):
    # alpha_ref : SMEM (E,)        pre-activated combination weights exp(w), f32
    # seq_ref   : VMEM (E, tn, F)  one batch tile of the stacked embeddings
    # fcw_ref   : VMEM (F, Cp)     fc weight, pre-transposed (optionally padded)
    # fcb_ref   : VMEM (1, Cp)     fc bias (padded entries are -1e30)
    # out_ref   : VMEM (tn, Cp)    log-softmax outputs for this batch tile
    E = seq_ref.shape[0]

    # Weighted sum over embeddings; accumulate in f32 regardless of input dtype.
    acc = alpha_ref[0] * seq_ref[0].astype(jnp.float32)
    for e in range(1, E):  # E is small & static -> unrolled multiply-add
        acc = acc + alpha_ref[e] * seq_ref[e].astype(jnp.float32)

    # Linear layer on the MXU. fcw's dtype selects the MXU input precision
    # (exact f32 by default, bf16 fast path when the wrapper requests it);
    # accumulation is always f32.
    logits = (
        jnp.dot(acc.astype(fcw_ref.dtype), fcw_ref[...],
                preferred_element_type=jnp.float32)
        + fcb_ref[...]
    )

    # Numerically-stable log_softmax along the class axis.
    m = jnp.max(logits, axis=-1, keepdims=True)
    shifted = logits - m
    lse = jnp.log(jnp.sum(jnp.exp(shifted), axis=-1, keepdims=True))
    out_ref[...] = (shifted - lse).astype(out_ref.dtype)


def _round_up(x, m):
    return ((x + m - 1) // m) * m


def _vmem_budget_bytes():
    """~2/3 of per-core physical VMEM (v5e/v6e: 128 MiB -> ~85 MiB,
    v7x: 64 MiB per TensorCore -> ~42 MiB). Conservative 40 MiB fallback."""
    try:
        cap = int(pltpu.get_tpu_info().vmem_capacity_bytes)
    except Exception:
        cap = 60 << 20
    return (cap * 2) // 3


def _pick_tile_n(N, E, F, C, seq_itemsize, fcw_itemsize, budget):
    """Largest batch tile whose padding-corrected, double-buffered working set
    fits the VMEM budget, capped so the grid has >=2 (>=4 for large N) steps."""
    F_pad = _round_up(F, 128)
    C_pad = _round_up(C, 128)
    # Grid-invariant residents: double-buffered fc weight + bias tiles.
    fixed = 2 * F_pad * C_pad * fcw_itemsize + 2 * 8 * C_pad * 4
    # Per-batch-row cost: double-buffered seq tile + double-buffered out tile
    # + in-kernel f32 accumulator, its MXU-dtype copy, and the f32 logits.
    per_row = (2 * E * F_pad * seq_itemsize
               + 2 * C_pad * 4
               + F_pad * 4 + F_pad * fcw_itemsize
               + C_pad * 4)
    avail = max(budget - fixed, per_row * 8)
    tn = max(8, (int(avail // per_row) // 8) * 8)
    # Guarantee multiple grid steps when the batch allows it so v7x's second
    # TensorCore participates and the DMA pipeline has iterations to overlap.
    if N >= 64:
        tn = min(tn, max(8, ((N // 4) // 8) * 8))
    elif N >= 16:
        tn = min(tn, max(8, ((N // 2) // 8) * 8))
    if tn >= N:
        tn = N  # single block == full (small) batch; full-dim block is legal
    return tn


def logreg_embeddings(seq, weight, fc_w, fc_b, *, tile_n=None,
                      mxu_dtype=None, pad_classes=False):
    """seq: (E, N, F) float (f32 or bf16); weight: (E, 1, 1);
    fc_w: (C, F); fc_b: (C,).

    mxu_dtype:   None -> exact f32 matmul (matches module); jnp.bfloat16 -> MXU
                 fast path (f32 accumulation) for large F*C on v6e/v7x.
    pad_classes: pad the class axis to 128 lanes (zero weights, -1e30 bias) for
                 unmasked lane-dense stores; padded columns are sliced off.
    """
    E, N, F = seq.shape
    C = fc_w.shape[0]

    fcw_dtype = jnp.float32 if mxu_dtype is None else mxu_dtype
    fcw = fc_w.T.astype(fcw_dtype)                  # glue: (F, C)
    fcb = fc_b.reshape(1, C).astype(jnp.float32)    # (1, C)

    C_out = C
    if pad_classes and C % 128 != 0:
        # Padded logits get bias -1e30 so they contribute exp(...)=0 to the
        # log-sum-exp and never perturb the real classes.
        C_out = _round_up(C, 128)
        fcw = jnp.pad(fcw, ((0, 0), (0, C_out - C)))
        fcb = jnp.pad(fcb, ((0, 0), (0, C_out - C)), constant_values=-1e30)

    budget = _vmem_budget_bytes()
    if tile_n is None:
        tn = _pick_tile_n(N, E, F, C_out, jnp.dtype(seq.dtype).itemsize,
                          jnp.dtype(fcw_dtype).itemsize, budget)
    else:
        tn = min(int(tile_n), N)
    grid = (pl.cdiv(N, tn),)

    # Hoisted activation: the kernel receives exp(weight) directly in SMEM.
    alphas = jnp.exp(weight.reshape(E).astype(jnp.float32))

    out = pl.pallas_call(
        logreg_embeddings_kernel,
        out_shape=jax.ShapeDtypeStruct((N, C_out), jnp.float32),
        grid=grid,
        in_specs=[
            # pre-activated combination weights: tiny, whole array in SMEM
            pl.BlockSpec(memory_space=pltpu.MemorySpace.SMEM),
            # seq: tiled along the batch axis -> streamed & double-buffered
            pl.BlockSpec((E, tn, F), lambda i: (0, i, 0)),
            # fc weight / bias: full blocks, constant index map (VMEM-resident)
            pl.BlockSpec((F, C_out), lambda i: (0, 0)),
            pl.BlockSpec((1, C_out), lambda i: (0, 0)),
        ],
        out_specs=pl.BlockSpec((tn, C_out), lambda i: (i, 0)),
        compiler_params=pltpu.CompilerParams(
            # batch tiles are independent -> shard across TensorCores on v7x
            dimension_semantics=("parallel",),
            # explicit limit: the 16 MiB (v5e) / 32 MiB defaults must not
            # throttle the budget-derived tiles.
            vmem_limit_bytes=int(budget),
        ),
    )(alphas, seq.astype(seq.dtype), fcw, fcb)

    return out[:, :C] if C_out != C else out


def _reference(seq, weight, fc_w, fc_b):
    alphas = jnp.exp(weight.astype(jnp.float32))                  # (E, 1, 1)
    outputs = jnp.sum(alphas * seq.astype(jnp.float32), axis=0)   # (N, F)
    logits = outputs @ fc_w.T + fc_b                              # (N, C)
    return jax.nn.log_softmax(logits, axis=-1)


if __name__ == "__main__":
    key = jax.random.PRNGKey(0)
    k_seq, k_fcw, k_seq2, k_seq4 = jax.random.split(key, 4)

    # ---- Test 1: small shapes consistent with the module ------------------
    #   num_embeddings E=4, batch N=8, ft_in F=32, nb_classes C=16
    E, N, F, C = 4, 8, 32, 16
    seq = jax.random.normal(k_seq, (E, N, F), dtype=jnp.float32)

    # Parameters (deterministic, mirroring the PyTorch __init__):
    #   self.weight filled with 0.1; fc: xavier_uniform_ weight, zero bias.
    weight = jnp.full((E, 1, 1), 0.1, dtype=jnp.float32)
    bound = (6.0 / (F + C)) ** 0.5
    fc_w = jax.random.uniform(k_fcw, (C, F), minval=-bound, maxval=bound,
                              dtype=jnp.float32)
    fc_b = jnp.zeros((C,), dtype=jnp.float32)

    out = jax.block_until_ready(logreg_embeddings(seq, weight, fc_w, fc_b))
    ref = _reference(seq, weight, fc_w, fc_b)
    assert out.shape == (N, C)
    assert jnp.allclose(out, ref, atol=1e-5, rtol=1e-5)

    # ---- Test 2: multi-tile grid over the batch axis (N=48, tn=16) --------
    N2 = 48
    seq2 = jax.random.normal(k_seq2, (E, N2, F), dtype=jnp.float32)
    out2 = jax.block_until_ready(
        logreg_embeddings(seq2, weight, fc_w, fc_b, tile_n=16))
    ref2 = _reference(seq2, weight, fc_w, fc_b)
    assert out2.shape == (N2, C)
    assert jnp.allclose(out2, ref2, atol=1e-5, rtol=1e-5)

    # ---- Test 3: bf16 seq streamed from HBM, exact f32 MXU (default) ------
    seq_bf16 = seq2.astype(jnp.bfloat16)
    out3 = jax.block_until_ready(
        logreg_embeddings(seq_bf16, weight, fc_w, fc_b, tile_n=16))
    ref3 = _reference(seq_bf16, weight, fc_w, fc_b)
    assert jnp.allclose(out3, ref3, atol=1e-3, rtol=1e-3)

    # ---- Test 4: auto tile picking on a larger batch (>=4 grid steps) -----
    N4 = 256
    seq4 = jax.random.normal(k_seq4, (E, N4, F), dtype=jnp.float32)
    out4 = jax.block_until_ready(logreg_embeddings(seq4, weight, fc_w, fc_b))
    ref4 = _reference(seq4, weight, fc_w, fc_b)
    assert out4.shape == (N4, C)
    assert jnp.allclose(out4, ref4, atol=1e-5, rtol=1e-5)

    # ---- Test 5: optional fast paths (bf16 MXU + lane-dense class padding) -
    out5 = jax.block_until_ready(
        logreg_embeddings(seq_bf16, weight, fc_w, fc_b, tile_n=16,
                          mxu_dtype=jnp.bfloat16, pad_classes=True))
    assert out5.shape == (N2, C)
    assert jnp.allclose(out5, ref3, atol=3e-2, rtol=3e-2)

    print("KERNEL_OK")
</pallas_src>

<mosaic_0001>
module attributes {stable_mosaic.version = 11 : i64} {
  func.func @logreg_embeddings_kernel(%arg0: i32, %arg1: memref<4xf32, #tpu.memory_space<smem>>, %arg2: memref<4x8x32xf32, #tpu.memory_space<vmem>>, %arg3: memref<32x16xf32, #tpu.memory_space<vmem>>, %arg4: memref<1x16xf32, #tpu.memory_space<vmem>>, %arg5: memref<8x16xf32, #tpu.memory_space<vmem>>) attributes {dimension_semantics = [#tpu.dimension_semantics<parallel>], iteration_bounds = array<i64: 1>, scalar_prefetch = 0 : i64, scratch_operands = 0 : i64, tpu.core_type = #tpu.core_type<tc>, window_params = [{transform_indices = @transform_0, window_bounds = array<i64: 4>}, {transform_indices = @transform_1, window_bounds = array<i64: 4, 8, 32>}, {pipeline_mode = #tpu.pipeline_mode<synchronous>, transform_indices = @transform_2, window_bounds = array<i64: 32, 16>}, {pipeline_mode = #tpu.pipeline_mode<synchronous>, transform_indices = @transform_3, window_bounds = array<i64: 1, 16>}, {transform_indices = @transform_4, window_bounds = array<i64: 8, 16>}]} {
    %c0 = arith.constant 0 : index
    %0 = memref.load %arg1[%c0] : memref<4xf32, #tpu.memory_space<smem>>
    %c0_0 = arith.constant 0 : index
    %c0_1 = arith.constant 0 : index
    %c0_2 = arith.constant 0 : index
    %1 = vector.load %arg2[%c0_0, %c0_1, %c0_2] : memref<4x8x32xf32, #tpu.memory_space<vmem>>, vector<1x8x32xf32>
    %2 = vector.shape_cast %1 : vector<1x8x32xf32> to vector<8x32xf32>
    %3 = vector.broadcast %0 : f32 to vector<8x32xf32>
    %4 = arith.mulf %3, %2 : vector<8x32xf32>
    %c1 = arith.constant 1 : index
    %5 = memref.load %arg1[%c1] : memref<4xf32, #tpu.memory_space<smem>>
    %c1_3 = arith.constant 1 : index
    %c0_4 = arith.constant 0 : index
    %c0_5 = arith.constant 0 : index
    %6 = vector.load %arg2[%c1_3, %c0_4, %c0_5] : memref<4x8x32xf32, #tpu.memory_space<vmem>>, vector<1x8x32xf32>
    %7 = vector.shape_cast %6 : vector<1x8x32xf32> to vector<8x32xf32>
    %8 = vector.broadcast %5 : f32 to vector<8x32xf32>
    %9 = arith.mulf %8, %7 : vector<8x32xf32>
    %10 = arith.addf %4, %9 : vector<8x32xf32>
    %c2 = arith.constant 2 : index
    %11 = memref.load %arg1[%c2] : memref<4xf32, #tpu.memory_space<smem>>
    %c2_6 = arith.constant 2 : index
    %c0_7 = arith.constant 0 : index
    %c0_8 = arith.constant 0 : index
    %12 = vector.load %arg2[%c2_6, %c0_7, %c0_8] : memref<4x8x32xf32, #tpu.memory_space<vmem>>, vector<1x8x32xf32>
    %13 = vector.shape_cast %12 : vector<1x8x32xf32> to vector<8x32xf32>
    %14 = vector.broadcast %11 : f32 to vector<8x32xf32>
    %15 = arith.mulf %14, %13 : vector<8x32xf32>
    %16 = arith.addf %10, %15 : vector<8x32xf32>
    %c3 = arith.constant 3 : index
    %17 = memref.load %arg1[%c3] : memref<4xf32, #tpu.memory_space<smem>>
    %c3_9 = arith.constant 3 : index
    %c0_10 = arith.constant 0 : index
    %c0_11 = arith.constant 0 : index
    %18 = vector.load %arg2[%c3_9, %c0_10, %c0_11] : memref<4x8x32xf32, #tpu.memory_space<vmem>>, vector<1x8x32xf32>
    %19 = vector.shape_cast %18 : vector<1x8x32xf32> to vector<8x32xf32>
    %20 = vector.broadcast %17 : f32 to vector<8x32xf32>
    %21 = arith.mulf %20, %19 : vector<8x32xf32>
    %22 = arith.addf %16, %21 : vector<8x32xf32>
    %c0_12 = arith.constant 0 : index
    %c0_13 = arith.constant 0 : index
    %23 = vector.load %arg3[%c0_12, %c0_13] : memref<32x16xf32, #tpu.memory_space<vmem>>, vector<32x16xf32>
    %cst = arith.constant dense<0.000000e+00> : vector<8x16xf32>
    %24 = tpu.matmul %22, %23, %cst {dimension_numbers = #tpu.dot_dimension_numbers<[1], [0], [0], [1], [0, 0, 1, 1], [], []>} : vector<8x32xf32>, vector<32x16xf32>, vector<8x16xf32> -> vector<8x16xf32>
    %c0_14 = arith.constant 0 : index
    %c0_15 = arith.constant 0 : index
    %25 = vector.load %arg4[%c0_14, %c0_15] : memref<1x16xf32, #tpu.memory_space<vmem>>, vector<1x16xf32>
    %26 = vector.broadcast %25 : vector<1x16xf32> to vector<8x16xf32>
    %27 = arith.addf %24, %26 : vector<8x16xf32>
    %cst_16 = arith.constant dense<0xFF800000> : vector<8xf32>
    %28 = vector.multi_reduction <maximumf>, %27, %cst_16 [1] : vector<8x16xf32> to vector<8xf32>
    %29 = vector.shape_cast %28 : vector<8xf32> to vector<8x1xf32>
    %30 = vector.broadcast %29 : vector<8x1xf32> to vector<8x16xf32>
    %31 = arith.subf %27, %30 : vector<8x16xf32>
    %32 = math.exp %31 : vector<8x16xf32>
    %cst_17 = arith.constant dense<0.000000e+00> : vector<8xf32>
    %33 = vector.multi_reduction <add>, %32, %cst_17 [1] : vector<8x16xf32> to vector<8xf32>
    %34 = vector.shape_cast %33 : vector<8xf32> to vector<8x1xf32>
    %35 = math.log %34 : vector<8x1xf32>
    %36 = vector.broadcast %35 : vector<8x1xf32> to vector<8x16xf32>
    %37 = arith.subf %31, %36 : vector<8x16xf32>
    %c0_18 = arith.constant 0 : index
    %c0_19 = arith.constant 0 : index
    %38 = vector.load %arg5[%c0_18, %c0_19] : memref<8x16xf32, #tpu.memory_space<vmem>>, vector<8x16xf32>
    tpu.vector_store %arg5[%c0_18, %c0_19], %37 {strides = array<i32>} : memref<8x16xf32, #tpu.memory_space<vmem>>, vector<8x16xf32>,
    return
  }
  func.func @transform_0(%arg0: i32) -> i32 {
    %c0_i32 = arith.constant 0 : i32
    %c0_i32_0 = arith.constant 0 : i32
    return %c0_i32 : i32
  }
  func.func @transform_1(%arg0: i32) -> (i32, i32, i32) {
    %c0_i32 = arith.constant 0 : i32
    %c0_i32_0 = arith.constant 0 : i32
    %c0_i32_1 = arith.constant 0 : i32
    return %c0_i32, %arg0, %c0_i32_0 : i32, i32, i32
  }
  func.func @transform_2(%arg0: i32) -> (i32, i32) {
    %c0_i32 = arith.constant 0 : i32
    %c0_i32_0 = arith.constant 0 : i32
    %c0_i32_1 = arith.constant 0 : i32
    return %c0_i32, %c0_i32_0 : i32, i32
  }
  func.func @transform_3(%arg0: i32) -> (i32, i32) {
    %c0_i32 = arith.constant 0 : i32
    %c0_i32_0 = arith.constant 0 : i32
    %c0_i32_1 = arith.constant 0 : i32
    return %c0_i32, %c0_i32_0 : i32, i32
  }
  func.func @transform_4(%arg0: i32) -> (i32, i32) {
    %c0_i32 = arith.constant 0 : i32
    %c0_i32_0 = arith.constant 0 : i32
    return %arg0, %c0_i32 : i32, i32
  }
}

</mosaic_0001>

<bundles_post_ra>
// kernel: tpu_custom_call.1
= control target key start
LH: loop header
LB: loop body
LE: loop exit
PB: predicated region body
PF: predicated region fallthrough
CT: control target
= control target key end

     0   :  { %9 = vsyncpa [#allocation4], 0  ;;  %s319_s0 = inlined_call_operand.vmem [shape: f32[4], index: 0, kind: input, shape index: {}]   ;;  %s320_s1 = inlined_call_operand.vmem [shape: f32[4,8,32], index: 1, kind: input, shape index: {}]   ;;  %s321_s2 = inlined_call_operand.vmem [shape: f32[32,16], index: 2, kind: input, shape index: {}]   ;;  %s322_s3 = inlined_call_operand.vmem [shape: f32[1,16], index: 3, kind: input, shape index: {}]   ;;  %s323_s4 = inlined_call_operand.hbm [shape: f32[8,16], index: 4, kind: output, shape index: {}]  }
   0x1   :  { %10 = vsyncpa [#allocation3], 0  ;;  %s17_s17 = sshll.u32 %s319_s0, 4  ;;  %s18_s17 = int_to_ptr.vmem [resolvable:$true] %s17_s17 }
   0x2   :  { %s206_s18 = scalar_lea.vmem %s18_s17, 16  ;;  %p211_p1 = scmp.lt.s32.totalorder %s18_s17, %s18_s17 }
   0x3   :  { %p207_p0 = scmp.ne.s32.totalorder %s18_s17, %s206_s18  ;;  %p212_p2 = scmp.lt.s32.totalorder %s206_s18, %s206_s18 }
   0x5   :  { %p213_p3 = por %p212_p2, %p211_p1 }
   0x7   :  { %p214_p4 = pnand %p213_p3, %p207_p0 }
   0x9   :  { %217 = shalt.err (!%p214_p4)
}
   0xa   :  { %s244_s19 = smov [#allocation2]  }
   0xb   :  { %20 = dma.vmem_to_smem %s18_s17, 16, %s244_s19, [#allocation4]  }
   0xc   :  { %240 = dma.done.wait [#allocation4], 16  }
   0xd   :  { %241 = vsyncadd [#allocation4], 4294967280 }
   0xe   :  { %30 = sfence }
   0xf   :  { %v53_v0 = vld [vmem:[%s321_s2] sm:$0xff]  ;;  %v54_v1 = vld [vmem:[%s321_s2 + $0x8] sm:$0xff]  ;;  %v55_v2 = vld [vmem:[%s321_s2 + $0x10] sm:$0xff]  ;;  %v245_v3 = vmov 0.0|0.0   ;;  %vm246_vm0 = vmmov 0   ;;  %v247_v6 = vmov 0.0  }
  0x10   :  { %191 = vmatprep.subr.bf16.mxu0 %v245_v3  ;;  %v192_v4 = vpack.c.bf16 %v54_v1, %v53_v0  ;;  %v56_v5 = vld [vmem:[%s321_s2 + $0x18] sm:$0xff]  ;;  %188 = vmatprep.mubr.msk.f32.mxu0 %vm246_vm0, %v247_v6  ;;  %s31_s27 = sld [smem:[#allocation2]]  ;;  %s167_s28 = sld [smem:[#allocation2 + $0x1]]  ;;  %v32_v8 = vld [vmem:[%s320_s1] sm:$0xff]  ;;  %v168_v9 = vld [vmem:[%s320_s1 + $0x8] sm:$0xff]  ;;  %vm64_vm1 = vcmask 261120  }
  0x11   :  { %s169_s29 = sld [smem:[#allocation2 + $0x2]]  ;;  %s171_s30 = sld [smem:[#allocation2 + $0x3]]  ;;  %v195_v7 = vpack.c.bf16 %v56_v5, %v55_v2  ;;  %v170_v10 = vld [vmem:[%s320_s1 + $0x10] sm:$0xff]  ;;  %v172_v13 = vld [vmem:[%s320_s1 + $0x18] sm:$0xff]  ;;  %v173_v23 = vld [vmem:[%s322_s3] ss:$0 sm:$0xff] }
  0x12   :  { %193 = vmatpush3.bf16.msra.mxu0 %v192_v4  ;;  %vm138_vm2 = vcmask 130048   ;;  %s248_s1 = smov [#allocation5]  }
  0x13   :  { %194 = vmatprep.subr.bf16.mxu0 %v245_v3  ;;  %s158_s3 = sshll.u32 %s248_s1, 4  ;;  %s159_s3 = int_to_ptr.vmem [resolvable:$true] %s158_s3 }
  0x14   :  { %s218_s14 = scalar_lea.vmem %s159_s3, 128  ;;  %p223_p6 = scmp.lt.s32.totalorder %s159_s3, %s159_s3 }
  0x15   :  { %p219_p5 = scmp.ne.s32.totalorder %s159_s3, %s218_s14  ;;  %p224_p7 = scmp.lt.s32.totalorder %s218_s14, %s218_s14 }
  0x16   :  { %196 = vmatpush3.bf16.msra.mxu0 %v195_v7  ;;  %v33_v11 = vstv %s31_s27  ;;  %v38_v12 = vstv %s167_s28 }
  0x17   :  { %v34_v14 = vmul.f32 %v33_v11, %v32_v8  ;;  %v39_v15 = vmul.f32 %v168_v9, %v38_v12  ;;  %v44_v16 = vstv %s169_s29  ;;  %v50_v17 = vstv %s171_s30  ;;  %p225_p8 = por %p224_p7, %p223_p6 }
  0x18   :  { %v45_v18 = vmul.f32 %v170_v10, %v44_v16  ;;  %v51_v20 = vmul.f32 %v172_v13, %v50_v17 }
  0x19   :  { %v40_v19 = vadd.f32 %v39_v15, %v34_v14  ;;  %p226_p9 = pnand %p225_p8, %p219_p5 }
  0x1b   :  { %v46_v21 = vadd.f32 %v45_v18, %v40_v19 }
  0x1d   :  { %v52_v22 = vadd.f32 %v51_v20, %v46_v21 }
  0x1f   :  { %189 = vmatmul.mubr.msk.f32.vlgmr.msra.gmra.mrb[0].mxu0 %vm64_vm1, %v52_v22 }
  0xf2   :  { %v134_v24 = vpop.f32.mrb[0].mxu0 }
  0xf3   :  { %v135_v25 = vadd.f32 %v173_v23, %v134_v24  ;;  %v190_v26 = vpop.f32.mrb[1].mxu0 }
  0xf5   :  { %v139_v27 = vsel %vm138_vm2, %v135_v25, -inf }
  0xf6   :  { %140 = vmax.xlane.f32.xlu0 %v139_v27 }
 0x183   :  { %v141_v28 = vpop.xlane.xlu0 %140 }
 0x184   :  { %v142_v29 = vsub.f32 %v135_v25, %v141_v28 }
 0x186   :  { %v143_v30 = vmul.f32 1.442695, %v142_v29 }
 0x188   :  { %202 = vpow2.f32 %v143_v30 }
 0x192   :  { %v203_v31 = vpop.eup %202 }
 0x193   :  { %v145_v32 = vsel %vm138_vm2, %v203_v31, 0.0 }
 0x194   :  { %146 = vadd.xlane.f32.xlu0 %v145_v32 }
 0x221   :  { %v147_v33 = vpop.xlane.xlu0 %146 }
 0x222   :  { %204 = vlog2.f32 %v147_v33 }
 0x22c   :  { %v205_v34 = vpop.eup %204 }
 0x22d   :  { %v149_v35 = vmul.f32 0.6931472, %v205_v34 }
 0x22f   :  { %v150_v36 = vsub.f32 %v142_v29, %v149_v35 }
 0x231   :  { %151 = vst.msk [vmem:[#allocation5] sm:$0xff] %vm138_vm2, %v150_v36 }
 0x232   :  { %229 = shalt.err (!%p226_p9)
}
 0x233   :  { %s230_s17 = scalar_lea.hbm %s323_s4, 128 }
 0x234   :  { %p231_p10 = scmp.ne.s32.totalorder %s323_s4, %s230_s17  ;;  %p234_p11 = scmp.lt.u32.totalorder %s230_s17, %s323_s4 }
 0x236   :  { %p236_p12 = pnand %p234_p11, %p231_p10 }
 0x238   :  { %239 = shalt.err (!%p236_p12)
}
 0x239   :  { %161 = dma.vmem_to_hbm [thread:$0]  %s159_s3, 128, %s323_s4, [#allocation3]  }
 0x23a   :  { %242 = dma.done.wait [#allocation3], 128  }
 0x23b   :  { %243 = vsyncadd [#allocation3], 4294967168 }
 0x23c   :  { %165 = vsyncpa [#allocation3], 1 }
 0x23d   :  { %166 = vsyncpa [#allocation4], 1 }

</bundles_post_ra>
